<compile_context>
chip_gen: v7x
topology: tpu7x:2x2x1
jax: 0.10.0
libtpu: 0.0.40
codegen_flags: <defaults>
</compile_context>

<pallas_src>
import functools

import jax
import jax.numpy as jnp
from jax import lax
from jax.experimental import pallas as pl
from jax.experimental.pallas import tpu as pltpu


def _round_up(n, m):
    return ((n + m - 1) // m) * m


def _slab_offsets(A, W, H):
    """Row offsets of each weight segment inside the packed weight slab."""
    a0 = _round_up(A, 8)          # [w2x | w1x]  : (A,  H+W)
    a1 = _round_up(H, 8)          # w1h          : (H,  W)
    a2 = _round_up(H, 8)          # w2h          : (H,  H)
    a3 = _round_up(W + H, 8)      # [w3i ; w3h]  : (W+H, A) -> padded to 128
    o0, o1, o2, o3 = 0, a0, a0 + a1, a0 + a1 + a2
    total = a0 + a1 + a2 + a3
    return (o0, o1, o2, o3, total)


def _rnn_kernel(x_ref, w_ref, b_ref, out_ref, *,
                A, W, H, B, o_xf, o_w1h, o_w2h, o_w3):
    """x_ref: (N*B, A) time-major inputs.  out_ref: (N*B, AP) padded logits."""
    NB = out_ref.shape[0]
    n_steps = NB // B                              # T - 1 (static)
    WH = W + H

    x = x_ref[...]                                 # (N*B, A) single bulk load

    # ---- packed weight / bias slabs, static sublane-aligned slices ----
    w_xf = w_ref[o_xf:o_xf + A, 0:WH]              # (A, H+W)  = [w2x | w1x]
    w1h = w_ref[o_w1h:o_w1h + H, 0:W]              # (H, W)
    w2h = w_ref[o_w2h:o_w2h + H, 0:H]              # (H, H)
    w3 = w_ref[o_w3:o_w3 + WH, :]                  # (W+H, AP) = [w3i ; w3h], lane-padded
    b_f = b_ref[0:1, 0:WH]                         # (1, H+W)  = [b2 | b1]
    b3 = b_ref[1:2, :]                             # (1, AP)   lane-padded

    # ---- batched x-side projections (one fused MXU call, N = H+W) ----
    xp = jnp.dot(x, w_xf, preferred_element_type=jnp.float32) + b_f   # (N*B, H+W)
    xp2 = xp[:, 0:H]                               # x @ w2x + b2
    inter_x = xp[:, H:WH]                          # x @ w1x + b1

    # ---- serial recurrence: one (B,H)@(H,H) matmul + add per step, in vregs ----
    h = jnp.zeros((B, H), jnp.float32)             # h_0 = 0
    h_olds, h_news = [], []
    for i in range(n_steps):                       # static -> fully unrolled
        h_olds.append(h)
        h = (xp2[i * B:(i + 1) * B, :]
             + jnp.dot(h, w2h, preferred_element_type=jnp.float32))
        h_news.append(h)

    h_old = jnp.concatenate(h_olds, axis=0)        # (N*B, H) hidden BEFORE each step
    h_new = jnp.concatenate(h_news, axis=0)        # (N*B, H) hidden AFTER each step

    # ---- batched output path ----
    inter = inter_x + jnp.dot(h_old, w1h, preferred_element_type=jnp.float32)
    ih = jnp.concatenate([inter, h_new], axis=1)   # (N*B, W+H)
    logits = jnp.dot(ih, w3, preferred_element_type=jnp.float32) + b3   # (N*B, AP)

    out_ref[...] = logits.astype(out_ref.dtype)    # one lane-dense bulk store


def pack_params(params, alphabet_size, model_width, hidden_size, lanes=128):
    """Pack the 9 parameter tensors into two lane-padded VMEM slabs (done once)."""
    (w1x, w1h, b1, w2x, w2h, b2, w3i, w3h, b3) = params
    A, W, H = alphabet_size, model_width, hidden_size
    assert lanes >= A and lanes % 128 == 0
    o0, o1, o2, o3, total = _slab_offsets(A, W, H)

    def pad(m, rows):
        out = jnp.zeros((rows, lanes), jnp.float32)
        return out.at[:m.shape[0], :m.shape[1]].set(m)

    w_xf = jnp.concatenate([w2x, w1x], axis=1)     # (A, H+W), hidden part first
    w3f = jnp.concatenate([w3i, w3h], axis=0)      # (W+H, A)
    w_slab = jnp.concatenate([
        pad(w_xf, o1 - o0),
        pad(w1h, o2 - o1),
        pad(w2h, o3 - o2),
        pad(w3f, total - o3),
    ], axis=0)                                     # (total, lanes)

    b_slab = jnp.zeros((8, lanes), jnp.float32)
    b_slab = b_slab.at[0, :H].set(b2[0]).at[0, H:H + W].set(b1[0])
    b_slab = b_slab.at[1, :A].set(b3[0])
    return w_slab, b_slab


@functools.partial(jax.jit, static_argnames=("model_width", "hidden_size"))
def word_generator_forward(word_tensor, w_slab, b_slab, *, model_width, hidden_size):
    """word_tensor: [B, T, A] float32.  Returns [B, T-1, A] float32."""
    B, T, A = word_tensor.shape
    W, H = model_width, hidden_size
    AP = w_slab.shape[1]
    N = T - 1                                      # last char is never consumed
    o0, o1, o2, o3, _ = _slab_offsets(A, W, H)

    # time-major flatten: (B, N, A) -> (N, B, A) -> (N*B, A)
    x_tm = jnp.transpose(word_tensor[:, :N], (1, 0, 2)).reshape(N * B, A)

    kernel = functools.partial(
        _rnn_kernel, A=A, W=W, H=H, B=B,
        o_xf=o0, o_w1h=o1, o_w2h=o2, o_w3=o3)

    vmem = pl.BlockSpec(memory_space=pltpu.MemorySpace.VMEM)
    out_pad = pl.pallas_call(
        kernel,
        out_shape=jax.ShapeDtypeStruct((N * B, AP), jnp.float32),
        in_specs=[vmem, vmem, vmem],
        out_specs=vmem,
    )(x_tm, w_slab, b_slab)

    # drop lane padding, back to (B, T-1, A)
    return jnp.transpose(out_pad[:, :A].reshape(N, B, A), (1, 0, 2))


def init_params(key, alphabet_size, model_width, hidden_size):
    """Deterministic synthetic weights. Weights are [in, out]; biases [1, out]."""
    A, W, H = alphabet_size, model_width, hidden_size
    ks = jax.random.split(key, 6)
    s1 = 1.0 / jnp.sqrt(A + H)
    s3 = 1.0 / jnp.sqrt(W + H)
    w1 = jax.random.uniform(ks[0], (A + H, W), jnp.float32, -s1, s1)
    b1 = jax.random.uniform(ks[1], (1, W), jnp.float32, -s1, s1)
    w2 = jax.random.uniform(ks[2], (A + H, H), jnp.float32, -s1, s1)
    b2 = jax.random.uniform(ks[3], (1, H), jnp.float32, -s1, s1)
    w3 = jax.random.uniform(ks[4], (W + H, A), jnp.float32, -s3, s3)
    b3 = jax.random.uniform(ks[5], (1, A), jnp.float32, -s3, s3)
    return (w1[:A], w1[A:], b1,
            w2[:A], w2[A:], b2,
            w3[:W], w3[W:], b3)


def reference_forward(word_tensor, params):
    """Pure-JAX reference mirroring the PyTorch loop (batched over words)."""
    (w1x, w1h, b1, w2x, w2h, b2, w3i, w3h, b3) = params
    B, T, A = word_tensor.shape
    H = w2x.shape[1]
    x_seq = jnp.transpose(word_tensor[:, :-1], (1, 0, 2))   # (T-1, B, A)

    def step(h, x):
        inter = x @ w1x + h @ w1h + b1
        h_new = x @ w2x + h @ w2h + b2
        logits = inter @ w3i + h_new @ w3h + b3
        return h_new, logits

    h0 = jnp.zeros((B, H), jnp.float32)
    _, outs = lax.scan(step, h0, x_seq)                     # (T-1, B, A)
    return jnp.transpose(outs, (1, 0, 2))                   # (B, T-1, A)


# TODO(synk): WordGenerator.generate() is a host-side stochastic decoding loop
# (categorical sampling until <EOW>); it has no clean single-kernel equivalent
# and is intentionally not implemented here.

if __name__ == "__main__":
    alphabet_size = 16
    model_width = 32
    hidden_size = 32
    T = 8
    B = 2                                                   # batched words per call

    key = jax.random.PRNGKey(0)
    k_params, k_input = jax.random.split(key)

    params = init_params(k_params, alphabet_size, model_width, hidden_size)
    w_slab, b_slab = pack_params(params, alphabet_size, model_width, hidden_size)

    # Synthetic "word" tensors: one-hot rows, shape [B, T, A] like the module.
    letter_ids = jax.random.randint(k_input, (B, T), 0, alphabet_size)
    word_tensor = jax.nn.one_hot(letter_ids, alphabet_size, dtype=jnp.float32)

    out = word_generator_forward(word_tensor, w_slab, b_slab,
                                 model_width=model_width, hidden_size=hidden_size)
    out = jax.block_until_ready(out)

    ref = jax.block_until_ready(reference_forward(word_tensor, params))
    assert out.shape == (B, T - 1, alphabet_size), out.shape
    assert jnp.allclose(out, ref, atol=1e-4, rtol=1e-4), (
        f"max abs diff {jnp.max(jnp.abs(out - ref))}")

    print("KERNEL_OK")
</pallas_src>

<mosaic_0001>
module attributes {stable_mosaic.version = 11 : i64} {
  func.func @_rnn_kernel(%arg0: memref<14x16xf32, #tpu.memory_space<vmem>>, %arg1: memref<144x128xf32, #tpu.memory_space<vmem>>, %arg2: memref<8x128xf32, #tpu.memory_space<vmem>>, %arg3: memref<14x128xf32, #tpu.memory_space<vmem>>) attributes {dimension_semantics = [], scalar_prefetch = 0 : i64, scratch_operands = 0 : i64, tpu.core_type = #tpu.core_type<tc>} {
    %c0 = arith.constant 0 : index
    %c0_0 = arith.constant 0 : index
    %0 = vector.load %arg0[%c0, %c0_0] : memref<14x16xf32, #tpu.memory_space<vmem>>, vector<14x16xf32>
    %c0_1 = arith.constant 0 : index
    %c0_2 = arith.constant 0 : index
    %1 = vector.load %arg1[%c0_1, %c0_2] : memref<144x128xf32, #tpu.memory_space<vmem>>, vector<16x64xf32>
    %c16 = arith.constant 16 : index
    %c0_3 = arith.constant 0 : index
    %2 = vector.load %arg1[%c16, %c0_3] : memref<144x128xf32, #tpu.memory_space<vmem>>, vector<32x32xf32>
    %c48 = arith.constant 48 : index
    %c0_4 = arith.constant 0 : index
    %3 = vector.load %arg1[%c48, %c0_4] : memref<144x128xf32, #tpu.memory_space<vmem>>, vector<32x32xf32>
    %c80 = arith.constant 80 : index
    %c0_5 = arith.constant 0 : index
    %4 = vector.load %arg1[%c80, %c0_5] : memref<144x128xf32, #tpu.memory_space<vmem>>, vector<64x128xf32>
    %c0_6 = arith.constant 0 : index
    %c0_7 = arith.constant 0 : index
    %5 = vector.load %arg2[%c0_6, %c0_7] : memref<8x128xf32, #tpu.memory_space<vmem>>, vector<1x64xf32>
    %c1 = arith.constant 1 : index
    %c0_8 = arith.constant 0 : index
    %6 = vector.load %arg2[%c1, %c0_8] : memref<8x128xf32, #tpu.memory_space<vmem>>, vector<1x128xf32>
    %cst = arith.constant dense<0.000000e+00> : vector<14x64xf32>
    %7 = tpu.matmul %0, %1, %cst {dimension_numbers = #tpu.dot_dimension_numbers<[1], [0], [0], [1], [0, 0, 1, 1], [], []>} : vector<14x16xf32>, vector<16x64xf32>, vector<14x64xf32> -> vector<14x64xf32>
    %8 = vector.broadcast %5 : vector<1x64xf32> to vector<14x64xf32>
    %9 = arith.addf %7, %8 : vector<14x64xf32>
    %10 = vector.extract_strided_slice %9 {offsets = [0, 0], sizes = [14, 32], strides = [1, 1]} : vector<14x64xf32> to vector<14x32xf32>
    %11 = vector.extract_strided_slice %9 {offsets = [0, 32], sizes = [14, 32], strides = [1, 1]} : vector<14x64xf32> to vector<14x32xf32>
    %cst_9 = arith.constant 0.000000e+00 : f32
    %12 = vector.broadcast %cst_9 : f32 to vector<2x32xf32>
    %13 = vector.extract_strided_slice %10 {offsets = [0, 0], sizes = [2, 32], strides = [1, 1]} : vector<14x32xf32> to vector<2x32xf32>
    %cst_10 = arith.constant dense<0.000000e+00> : vector<2x32xf32>
    %14 = tpu.matmul %12, %3, %cst_10 {dimension_numbers = #tpu.dot_dimension_numbers<[1], [0], [0], [1], [0, 0, 1, 1], [], []>} : vector<2x32xf32>, vector<32x32xf32>, vector<2x32xf32> -> vector<2x32xf32>
    %15 = arith.addf %13, %14 : vector<2x32xf32>
    %16 = vector.extract_strided_slice %10 {offsets = [2, 0], sizes = [2, 32], strides = [1, 1]} : vector<14x32xf32> to vector<2x32xf32>
    %cst_11 = arith.constant dense<0.000000e+00> : vector<2x32xf32>
    %17 = tpu.matmul %15, %3, %cst_11 {dimension_numbers = #tpu.dot_dimension_numbers<[1], [0], [0], [1], [0, 0, 1, 1], [], []>} : vector<2x32xf32>, vector<32x32xf32>, vector<2x32xf32> -> vector<2x32xf32>
    %18 = arith.addf %16, %17 : vector<2x32xf32>
    %19 = vector.extract_strided_slice %10 {offsets = [4, 0], sizes = [2, 32], strides = [1, 1]} : vector<14x32xf32> to vector<2x32xf32>
    %cst_12 = arith.constant dense<0.000000e+00> : vector<2x32xf32>
    %20 = tpu.matmul %18, %3, %cst_12 {dimension_numbers = #tpu.dot_dimension_numbers<[1], [0], [0], [1], [0, 0, 1, 1], [], []>} : vector<2x32xf32>, vector<32x32xf32>, vector<2x32xf32> -> vector<2x32xf32>
    %21 = arith.addf %19, %20 : vector<2x32xf32>
    %22 = vector.extract_strided_slice %10 {offsets = [6, 0], sizes = [2, 32], strides = [1, 1]} : vector<14x32xf32> to vector<2x32xf32>
    %cst_13 = arith.constant dense<0.000000e+00> : vector<2x32xf32>
    %23 = tpu.matmul %21, %3, %cst_13 {dimension_numbers = #tpu.dot_dimension_numbers<[1], [0], [0], [1], [0, 0, 1, 1], [], []>} : vector<2x32xf32>, vector<32x32xf32>, vector<2x32xf32> -> vector<2x32xf32>
    %24 = arith.addf %22, %23 : vector<2x32xf32>
    %25 = vector.extract_strided_slice %10 {offsets = [8, 0], sizes = [2, 32], strides = [1, 1]} : vector<14x32xf32> to vector<2x32xf32>
    %cst_14 = arith.constant dense<0.000000e+00> : vector<2x32xf32>
    %26 = tpu.matmul %24, %3, %cst_14 {dimension_numbers = #tpu.dot_dimension_numbers<[1], [0], [0], [1], [0, 0, 1, 1], [], []>} : vector<2x32xf32>, vector<32x32xf32>, vector<2x32xf32> -> vector<2x32xf32>
    %27 = arith.addf %25, %26 : vector<2x32xf32>
    %28 = vector.extract_strided_slice %10 {offsets = [10, 0], sizes = [2, 32], strides = [1, 1]} : vector<14x32xf32> to vector<2x32xf32>
    %cst_15 = arith.constant dense<0.000000e+00> : vector<2x32xf32>
    %29 = tpu.matmul %27, %3, %cst_15 {dimension_numbers = #tpu.dot_dimension_numbers<[1], [0], [0], [1], [0, 0, 1, 1], [], []>} : vector<2x32xf32>, vector<32x32xf32>, vector<2x32xf32> -> vector<2x32xf32>
    %30 = arith.addf %28, %29 : vector<2x32xf32>
    %31 = vector.extract_strided_slice %10 {offsets = [12, 0], sizes = [2, 32], strides = [1, 1]} : vector<14x32xf32> to vector<2x32xf32>
    %cst_16 = arith.constant dense<0.000000e+00> : vector<2x32xf32>
    %32 = tpu.matmul %30, %3, %cst_16 {dimension_numbers = #tpu.dot_dimension_numbers<[1], [0], [0], [1], [0, 0, 1, 1], [], []>} : vector<2x32xf32>, vector<32x32xf32>, vector<2x32xf32> -> vector<2x32xf32>
    %33 = arith.addf %31, %32 : vector<2x32xf32>
    %34 = tpu.concatenate %12, %15, %18, %21, %24, %27, %30 in 0 : vector<2x32xf32>, vector<2x32xf32>, vector<2x32xf32>, vector<2x32xf32>, vector<2x32xf32>, vector<2x32xf32>, vector<2x32xf32> -> vector<14x32xf32>
    %35 = tpu.concatenate %15, %18, %21, %24, %27, %30, %33 in 0 : vector<2x32xf32>, vector<2x32xf32>, vector<2x32xf32>, vector<2x32xf32>, vector<2x32xf32>, vector<2x32xf32>, vector<2x32xf32> -> vector<14x32xf32>
    %cst_17 = arith.constant dense<0.000000e+00> : vector<14x32xf32>
    %36 = tpu.matmul %34, %2, %cst_17 {dimension_numbers = #tpu.dot_dimension_numbers<[1], [0], [0], [1], [0, 0, 1, 1], [], []>} : vector<14x32xf32>, vector<32x32xf32>, vector<14x32xf32> -> vector<14x32xf32>
    %37 = arith.addf %11, %36 : vector<14x32xf32>
    %38 = tpu.concatenate %37, %35 in 1 : vector<14x32xf32>, vector<14x32xf32> -> vector<14x64xf32>
    %cst_18 = arith.constant dense<0.000000e+00> : vector<14x128xf32>
    %39 = tpu.matmul %38, %4, %cst_18 {dimension_numbers = #tpu.dot_dimension_numbers<[1], [0], [0], [1], [0, 0, 1, 1], [], []>} : vector<14x64xf32>, vector<64x128xf32>, vector<14x128xf32> -> vector<14x128xf32>
    %40 = vector.broadcast %6 : vector<1x128xf32> to vector<14x128xf32>
    %41 = arith.addf %39, %40 : vector<14x128xf32>
    %c0_19 = arith.constant 0 : index
    %c0_20 = arith.constant 0 : index
    %42 = vector.load %arg3[%c0_19, %c0_20] : memref<14x128xf32, #tpu.memory_space<vmem>>, vector<14x128xf32>
    tpu.vector_store %arg3[%c0_19, %c0_20], %41 {strides = array<i32>} : memref<14x128xf32, #tpu.memory_space<vmem>>, vector<14x128xf32>,
    return
  }
}

</mosaic_0001>

<bundles_post_ra>
// kernel: word_generator_forward.1
= control target key start
LH: loop header
LB: loop body
LE: loop exit
PB: predicated region body
PF: predicated region fallthrough
CT: control target
= control target key end

     0   :  { %8 = vsyncpa [#allocation3], 0  ;;  %s1185_s12 = smov [#allocation2]   ;;  %s1329_s0 = inlined_call_operand.vmem [shape: f32[14,16], index: 0, kind: input, shape index: {}]   ;;  %s1330_s1 = inlined_call_operand.hbm [shape: f32[144,128], index: 1, kind: input, shape index: {}]   ;;  %s1331_s2 = inlined_call_operand.vmem [shape: f32[8,128], index: 2, kind: input, shape index: {}]   ;;  %s1332_s3 = inlined_call_operand.vmem [shape: f32[14,128], index: 3, kind: output, shape index: {}]  }
   0x1   :  { %s16_s13 = sshll.u32 %s1185_s12, 4  ;;  %s1161_s16 = scalar_lea.hbm %s1330_s1, 2304  ;;  %s17_s13 = int_to_ptr.vmem [resolvable:$true] %s16_s13 }
   0x2   :  { %p1162_p0 = scmp.ne.s32.totalorder %s1330_s1, %s1161_s16  ;;  %p1165_p1 = scmp.lt.u32.totalorder %s1161_s16, %s1330_s1 }
   0x4   :  { %p1167_p2 = pnand %p1165_p1, %p1162_p0 }
   0x6   :  { %1170 = shalt.err (!%p1167_p2)
}
   0x7   :  { %s1171_s21 = scalar_lea.vmem %s17_s13, 2304  ;;  %p1176_p4 = scmp.lt.s32.totalorder %s17_s13, %s17_s13 }
   0x8   :  { %p1172_p3 = scmp.ne.s32.totalorder %s17_s13, %s1171_s21  ;;  %p1177_p5 = scmp.lt.s32.totalorder %s1171_s21, %s1171_s21 }
   0xa   :  { %p1178_p6 = por %p1177_p5, %p1176_p4 }
   0xc   :  { %p1179_p7 = pnand %p1178_p6, %p1172_p3 }
   0xe   :  { %1182 = shalt.err (!%p1179_p7)
}
   0xf   :  { %s1186_s22 = smov 128   ;;  %s1187_s23 = smov 8  }
  0x10   :  { %22 = dma.hbm_to_vmem [thread:$0]  %s1330_s1, 2304, %s17_s13, [#allocation3], %s1186_s22, %s1186_s22, %s1187_s23  }
  0x11   :  { %1183 = dma.done.wait [#allocation3], 2304  }
  0x12   :  { %1184 = vsyncadd [#allocation3], 4294964992  ;;  %v1188_v0 = vmov 0.0|0.0   ;;  %vm1189_vm0 = vmmov 0   ;;  %v1190_v1 = vmov 0.0   ;;  %vm54_vm1 = vcmask 130048  }
  0x13   :  { %1099 = vmatprep.subr.bf16.mxu1 %v1188_v0  ;;  %1006 = vmatprep.mubr.msk.f32.mxu1 %vm1189_vm0, %v1190_v1  ;;  %v30_v2 = vld [vmem:[#allocation2] sm:$0xff]  ;;  %v31_v3 = vld [vmem:[#allocation2 + $0x8] sm:$0xff]  ;;  %v36_v6 = vld [vmem:[#allocation2 + $0x30] sm:$0xff]  ;;  %vm136_vm2 = vcmask 261120   ;;  %vm685_vm3 = vcmask 1041408   ;;  %vm687_vm4 = vcmask 1043456  }
  0x14   :  { %v28_v4 = vld [vmem:[%s1329_s0] sm:$0xff]  ;;  %v1083_v5 = vpack.c.bf16 %v31_v3, %v30_v2  ;;  %v37_v7 = vld [vmem:[#allocation2 + $0x38] sm:$0xff]  ;;  %v29_v9 = vld [vmem:[%s1329_s0 + $0x8] sm:$0x3f]  ;;  %vm689_vm5 = vcmask 1045504   ;;  %s1191_s30 = smov 32  }
  0x15   :  { %973 = vmatprep.mubr.msk.f32.mxu0 %vm54_vm1, %v28_v4  ;;  %v1232_v8 = vpack.c.bf16 %v37_v7, %v36_v6  ;;  %v38_v10 = vld [vmem:[#allocation2 + $0x40] sm:$0xff]  ;;  %v39_v11 = vld [vmem:[#allocation2 + $0x48] sm:$0xff]  ;;  %v32_v48 = vld [vmem:[#allocation2 + $0x10] sm:$0xff]  ;;  %s1192_s4 = smov 96   ;;  %vm811_vm6 = vcmask 523264  }
  0x16   :  { %1084 = vmatprep.subr.bf16.mxu0 %v1083_v5  ;;  %v1241_v12 = vpack.c.bf16 %v39_v11, %v38_v10  ;;  %v900_v13 = vld [vmem:[%s1331_s2] ss:$0 sm:$0xff]  ;;  %v33_v49 = vld [vmem:[#allocation2 + $0x18] sm:$0xff]  ;;  %v35_v52 = vld [vmem:[#allocation2 + $0x28] sm:$0xff] }
  0x17   :  { %1086 = vmatpush3.bf16.msra.mxu0 %v1083_v5  ;;  %1101 = vmatpush3.bf16.msra.mxu1 %v1232_v8  ;;  %v1129_v50 = vpack.c.bf16 %v33_v49, %v32_v48  ;;  %v34_v51 = vld [vmem:[#allocation2 + $0x20] sm:$0xff]  ;;  %v40_v63 = vld [vmem:[#allocation2 + $0x50] sm:$0xff]  ;;  %v43_v3 = vld [vmem:[#allocation2 + $0x68] sm:$0xff] }
  0x18   :  { %1087 = vmatprep.subr.bf16.mxu0 %v1188_v0  ;;  %1102 = vmatprep.subr.bf16.mxu1 %v1188_v0  ;;  %v1133_v53 = vpack.c.bf16 %v35_v52, %v34_v51  ;;  %v44_v5 = vld [vmem:[#allocation2 + $0x70] sm:$0xff]  ;;  %v45_v6 = vld [vmem:[#allocation2 + $0x78] sm:$0xff] }
  0x19   :  { %v1145_v11 = vpack.c.bf16 %v45_v6, %v44_v5 }
  0x1a   :  { %974 = vmatmul.mubr.msk.f32.vlgmr.msra.gmra.mrb[0].mxu0 %vm54_vm1, %v29_v9 }
  0x1b   :  { %1089 = vmatpush3.bf16.msra.mxu0 %v1232_v8  ;;  %984 = vmatprep.mubr.msk.f32.mxu0 %vm1189_vm0, %v1190_v1 }
  0x1c   :  { %1090 = vmatprep.subr.bf16.mxu0 %v1188_v0  ;;  %1104 = vmatpush3.bf16.msra.mxu1 %v1241_v12 }
  0x1d   :  { %1111 = vmatprep.subr.bf16.mxu1 %v1188_v0 }
  0x1f   :  { %1092 = vmatpush3.bf16.msra.mxu0 %v1241_v12 }
  0x20   :  { %1093 = vmatprep.subr.bf16.mxu0 %v1188_v0 }
  0x22   :  { %985 = vmatmul.mubr.f32.vlgmr.msra.gmra.mrb[2].mxu0 %v1190_v1 }
  0x23   :  { %1095 = vmatpush3.bf16.msra.mxu0 %v1232_v8  ;;  %995 = vmatprep.mubr.msk.f32.mxu0 %vm1189_vm0, %v1190_v1 }
  0x24   :  { %1096 = vmatprep.subr.bf16.mxu0 %v1188_v0 }
  0x27   :  { %1098 = vmatpush3.bf16.msra.mxu0 %v1241_v12 }
  0x28   :  { %1105 = vmatprep.subr.bf16.mxu0 %v1188_v0 }
  0xed   :  { %v975_v14 = vpop.f32.mrb[0].mxu0 }
  0xee   :  { %v1261_v15 = vadd.f32 %v975_v14, %v900_v13  ;;  %v127_v16 = vpop.f32.mrb[1].mxu0 }
  0xef   :  { %v1263_v17 = vadd.f32 %v900_v13, %v127_v16 }
  0xf5   :  { %v206_v18 = vpop.f32.mrb[2].mxu0 }
  0xf6   :  { %v210_v19 = vadd.f32 %v206_v18, %v1263_v17  ;;  %v986_v20 = vpop.f32.mrb[3].mxu0  ;;  %v46_v18 = vld [vmem:[#allocation2 + $0x80] sm:$0xff] }
  0xf8   :  { %996 = vmatmul.mubr.msk.f32.vlgmr.msra.gmra.mrb[4].mxu0 %vm136_vm2, %v210_v19  ;;  %v674_v27 = vrot.slane %v210_v19, 6 }
  0xf9   :  { %1107 = vmatpush3.bf16.msra.mxu0 %v1232_v8  ;;  %1017 = vmatprep.mubr.msk.f32.mxu0 %vm1189_vm0, %v1190_v1 }
  0xfa   :  { %1108 = vmatprep.subr.bf16.mxu0 %v1188_v0  ;;  %v686_v33 = vsel %vm685_vm3, 0.0, %v674_v27 }
  0xfd   :  { %1110 = vmatpush3.bf16.msra.mxu0 %v1241_v12 }
  0xfe   :  { %1117 = vmatprep.subr.bf16.mxu0 %v1188_v0 }
 0x1cb   :  { %v280_v21 = vpop.f32.mrb[4].mxu0 }
 0x1cc   :  { %v285_v22 = vrot.slane %v280_v21, 6  ;;  %v997_v23 = vpop.f32.mrb[5].mxu0 }
 0x1ce   :  { %v287_v24 = vadd.f32 %v285_v22, %v1263_v17 }
 0x1d0   :  { %v289_v25 = vrot.slane %v287_v24, 2  ;;  %v676_v30 = vrot.slane %v287_v24, 6  ;;  %v693_v32 = vsel %vm685_vm3, %v210_v19, %v287_v24  ;;  %v47_v19 = vld [vmem:[#allocation2 + $0x88] sm:$0xff] }
 0x1d1   :  { %v1149_v20 = vpack.c.bf16 %v47_v19, %v46_v18 }
 0x1d2   :  { %1007 = vmatmul.mubr.msk.f32.vlgmr.msra.gmra.mrb[0].mxu1 %vm136_vm2, %v289_v25  ;;  %v688_v37 = vsel %vm687_vm4, %v686_v33, %v676_v30 }
 0x1d3   :  { %1113 = vmatpush3.bf16.msra.mxu1 %v1232_v8  ;;  %1028 = vmatprep.mubr.msk.f32.mxu1 %vm1189_vm0, %v1190_v1 }
 0x1d4   :  { %1114 = vmatprep.subr.bf16.mxu1 %v1188_v0 }
 0x1d7   :  { %1116 = vmatpush3.bf16.msra.mxu1 %v1241_v12 }
 0x1d8   :  { %1123 = vmatprep.subr.bf16.mxu1 %v1188_v0 }
 0x2a5   :  { %v358_v26 = vpop.f32.mrb[0].mxu1 }
 0x2a6   :  { %v363_v28 = vrot.slane %v358_v26, 4  ;;  %v1008_v29 = vpop.f32.mrb[1].mxu1 }
 0x2a8   :  { %v365_v31 = vadd.f32 %v363_v28, %v1263_v17 }
 0x2aa   :  { %v367_v34 = vrot.slane %v365_v31, 4  ;;  %v678_v35 = vrot.slane %v365_v31, 6  ;;  %v694_v36 = vsel %vm687_vm4, %v693_v32, %v365_v31 }
 0x2ac   :  { %1018 = vmatmul.mubr.msk.f32.vlgmr.msra.gmra.mrb[6].mxu0 %vm136_vm2, %v367_v34  ;;  %v690_v38 = vsel %vm689_vm5, %v688_v37, %v678_v35 }
 0x2ad   :  { %1119 = vmatpush3.bf16.msra.mxu0 %v1232_v8  ;;  %1039 = vmatprep.mubr.msk.f32.mxu0 %vm1189_vm0, %v1190_v1 }
 0x2ae   :  { %1120 = vmatprep.subr.bf16.mxu0 %v1188_v0 }
 0x2b1   :  { %1122 = vmatpush3.bf16.msra.mxu0 %v1241_v12 }
 0x2b2   :  { %1130 = vmatprep.subr.bf16.mxu0 %v1129_v50 }
 0x37f   :  { %v436_v39 = vpop.f32.mrb[6].mxu0 }
 0x380   :  { %v441_v40 = vrot.slane %v436_v39, 2  ;;  %v1019_v41 = vpop.f32.mrb[7].mxu0 }
 0x382   :  { %v443_v42 = vadd.f32 %v441_v40, %v1263_v17 }
 0x384   :  { %v445_v43 = vrot.slane %v443_v42, 6  ;;  %v695_v44 = vsel %vm689_vm5, %v694_v36, %v443_v42 }
 0x385   :  { %799 = vrot.lane.b32.xlu1 %v695_v44, %s1191_s30 }
 0x386   :  { %1029 = vmatmul.mubr.msk.f32.vlgmr.msra.gmra.mrb[2].mxu1 %vm136_vm2, %v445_v43 }
 0x387   :  { %1125 = vmatpush3.bf16.msra.mxu1 %v1232_v8  ;;  %1050 = vmatprep.mubr.msk.f32.mxu1 %vm1189_vm0, %v1190_v1  ;;  %v42_v1 = vld [vmem:[#allocation2 + $0x60] sm:$0xff] }
 0x388   :  { %1126 = vmatprep.subr.bf16.mxu1 %v1188_v0  ;;  %v41_v0 = vld [vmem:[#allocation2 + $0x58] sm:$0xff]  ;;  %v1141_v4 = vpack.c.bf16 %v43_v3, %v42_v1 }
 0x389   :  { %v1137_v2 = vpack.c.bf16 %v41_v0, %v40_v63 }
 0x38b   :  { %1128 = vmatpush3.bf16.msra.mxu1 %v1241_v12 }
 0x38c   :  { %1138 = vmatprep.subr.bf16.mxu1 %v1137_v2 }
 0x3f7   :  { %v800_v25 = vpop.permute.xlu1 %799 }
 0x459   :  { %v514_v45 = vpop.f32.mrb[2].mxu1 }
 0x45a   :  { %v518_v46 = vadd.f32 %v514_v45, %v1261_v15  ;;  %v1030_v47 = vpop.f32.mrb[3].mxu1 }
 0x45c   :  { %1040 = vmatmul.mubr.msk.f32.vlgmr.msra.gmra.mrb[8].mxu0 %vm136_vm2, %v518_v46  ;;  %v681_v57 = vrot.slane %v518_v46, 6 }
 0x45d   :  { %1061 = vmatprep.mubr.msk.f32.mxu0 %vm136_vm2, %v690_v38  ;;  %1132 = vmatpush3.bf16.msra.mxu0 %v1129_v50 }
 0x45e   :  { %1134 = vmatprep.subr.bf16.mxu0 %v1133_v53  ;;  %v691_v61 = vsel %vm685_vm3, %v445_v43, %v681_v57 }
 0x461   :  { %1136 = vmatpush3.bf16.msra.mxu0 %v1133_v53 }
 0x52f   :  { %v588_v54 = vpop.f32.mrb[8].mxu0 }
 0x530   :  { %v593_v55 = vrot.slane %v588_v54, 6  ;;  %v1041_v56 = vpop.f32.mrb[9].mxu0 }
 0x532   :  { %v595_v58 = vadd.f32 %v593_v55, %v1261_v15 }
 0x534   :  { %v597_v59 = vrot.slane %v595_v58, 2  ;;  %v683_v60 = vrot.slane %v595_v58, 6  ;;  %v696_v14 = vsel %vm685_vm3, %v518_v46, %v595_v58 }
 0x536   :  { %1051 = vmatmul.mubr.msk.f32.vlgmr.msra.gmra.mrb[4].mxu1 %vm136_vm2, %v597_v59  ;;  %v692_v62 = vsel %vm687_vm4, %v691_v61, %v683_v60 }
 0x537   :  { %1062 = vmatmul.mubr.msk.f32.vlgmr.msra.gmra.mrb[10].mxu0 %vm136_vm2, %v692_v62  ;;  %1140 = vmatpush3.bf16.msra.mxu1 %v1137_v2 }
 0x538   :  { %1142 = vmatprep.subr.bf16.mxu1 %v1141_v4 }
 0x53b   :  { %1144 = vmatpush3.bf16.msra.mxu1 %v1141_v4 }
 0x53c   :  { %1146 = vmatprep.subr.bf16.mxu1 %v1145_v11 }
 0x53f   :  { %1148 = vmatpush3.bf16.msra.mxu1 %v1145_v11 }
 0x540   :  { %1150 = vmatprep.subr.bf16.mxu1 %v1149_v20 }
 0x543   :  { %1152 = vmatpush3.bf16.msra.mxu1 %v1149_v20 }
 0x609   :  { %v666_v7 = vpop.f32.mrb[4].mxu1 }
 0x60a   :  { %v671_v8 = vrot.slane %v666_v7, 4  ;;  %v1052_v9 = vpop.f32.mrb[5].mxu1  ;;  %v1063_v10 = vpop.f32.mrb[10].mxu0 }
 0x60b   :  { %v770_v12 = vpop.f32.mrb[11].mxu0 }
 0x60c   :  { %v673_v13 = vadd.f32 %v671_v8, %v1261_v15  ;;  %781 = vrot.lane.b32.xlu0 %v770_v12, %s1191_s30 }
 0x60e   :  { %v697_v16 = vsel %vm687_vm4, %v696_v14, %v673_v13 }
 0x610   :  { %783 = vrot.lane.b32.xlu0 %v1063_v10, %s1191_s30 }
 0x67e   :  { %v782_v21 = vpop.permute.xlu0 %781 }
 0x67f   :  { %v787_v22 = vadd.f32 %v782_v21, %v1263_v17  ;;  %v911_v17 = vld [vmem:[%s1331_s2 + $0x1] ss:$0 sm:$0xff] }
 0x681   :  { %791 = vrot.lane.b32.xlu1 %v787_v22, %s1192_s4 }
 0x682   :  { %v784_v23 = vpop.permute.xlu0 %783 }
 0x683   :  { %v788_v24 = vadd.f32 %v784_v23, %v1261_v15 }
 0x685   :  { %801 = vrot.lane.b32.xlu1 %v697_v16, %s1191_s30  ;;  %793 = vrot.lane.b32.xlu0 %v788_v24, %s1192_s4 }
 0x6f3   :  { %v792_v26 = vpop.permute.xlu1 %791 }
 0x6f4   :  { %v805_v27 = vsel %vm136_vm2, %v792_v26, %v800_v25 }
 0x6f5   :  { %1080 = vmatprep.mubr.msk.f32.mxu1 %vm811_vm6, %v805_v27 }
 0x6f7   :  { %v802_v28 = vpop.permute.xlu1 %801  ;;  %v794_v29 = vpop.permute.xlu0 %793 }
 0x6f8   :  { %v806_v30 = vsel %vm136_vm2, %v794_v29, %v802_v28 }
 0x6f9   :  { %1081 = vmatmul.mubr.msk.f32.vlgmr.msra.gmra.mrb[6].mxu1 %vm811_vm6, %v806_v30 }
 0x7cc   :  { %v1082_v31 = vpop.f32.mrb[6].mxu1 }
 0x7cd   :  { %v890_v15 = vadd.f32 %v1082_v31, %v911_v17  ;;  %v884_v32 = vpop.f32.mrb[7].mxu1 }
 0x7ce   :  { %v885_v33 = vadd.f32 %v911_v17, %v884_v32 }
 0x7cf   :  { %894 = vst [vmem:[%s1332_s3 + $0x8] sm:$0x3f] %v890_v15 }
 0x7d0   :  { %893 = vst [vmem:[%s1332_s3] sm:$0xff] %v885_v33 }
 0x7d1   :  { %899 = vsyncpa [#allocation3], 1 }

</bundles_post_ra>
